<compile_context>
chip_gen: v6e
topology: v6e:2x2x1
jax: 0.10.0
libtpu: 0.0.40
codegen_flags: <defaults>
</compile_context>

<pallas_src>
import functools

import jax
import jax.numpy as jnp
from jax.experimental import pallas as pl
from jax.experimental.pallas import tpu as pltpu

MARGINS = (0.1, 0.085, 0.07, 0.04)
_EPS = 1e-6            # PyTorch TripletMarginLoss / pairwise_distance eps
_MAX_TILE_N = 8192     # sanity cap on rows per tile


def _round_up(x, m):
    return ((x + m - 1) // m) * m


def _hw_config():
    """(num_shards, vmem_budget_bytes, vmem_limit_bytes) per TPU generation."""
    try:
        kind = jax.devices()[0].device_kind.lower()
    except Exception:
        kind = ""
    if "v7" in kind or "7x" in kind:
        # 2 TensorCores / chip, 64 MiB VMEM per TC.
        return 2, 40 * 1024 * 1024, 56 * 1024 * 1024
    # v5e / v6e (and other single-TC parts): 128 MiB physical VMEM.
    return 1, 64 * 1024 * 1024, 100 * 1024 * 1024


def _sublane_pack(itemsize):
    # Native sublane packing: 8 rows for 4-byte, 16 for 2-byte, 32 for 1-byte.
    return max(8, 32 // max(1, itemsize))


def _choose_tile_n(n, d, itemsize, num_shards, vmem_budget, pack):
    # Double-buffered resident bytes per tile row:
    #   3 inputs * d * itemsize each, plus the (tile_n, 1) f32 margins block
    #   which lane-pads to 128 f32 lanes in VMEM.
    per_row = 2 * (3 * d * itemsize + 128 * 4)
    cap = max(pack, (vmem_budget // per_row // pack) * pack)
    cap = min(cap, _MAX_TILE_N)
    need = _round_up(max(1, pl.cdiv(n, num_shards)), pack)
    return min(cap, need)


def _triplet_kernel(margin_ref, a_ref, p_ref, n_ref, o_ref, acc_ref, *,
                    n_true, tile_n, needs_mask):
    shard = pl.program_id(0)
    step = pl.program_id(1)
    num_steps = pl.num_programs(1)

    @pl.when(step == 0)
    def _():
        acc_ref[...] = jnp.zeros_like(acc_ref)

    # Inputs stream at native width from HBM; cast per-tile on the VPU.
    a = a_ref[...].astype(jnp.float32)
    p = p_ref[...].astype(jnp.float32)
    ng = n_ref[...].astype(jnp.float32)

    # PyTorch pairwise_distance: ||x1 - x2 + eps||_2 (eps added to the diff).
    d_ap = jnp.sqrt(jnp.sum((a - p + _EPS) ** 2, axis=-1, keepdims=True))
    d_an = jnp.sqrt(jnp.sum((a - ng + _EPS) ** 2, axis=-1, keepdims=True))
    loss = jnp.maximum(d_ap - d_an + margin_ref[...].astype(jnp.float32), 0.0)

    if needs_mask:
        # Global row id from the *unclamped* block id; rows past N (partial
        # last block or clamped duplicate blocks) contribute zero.
        row = (shard * num_steps + step) * tile_n + jax.lax.broadcasted_iota(
            jnp.int32, (tile_n, 1), 0)
        loss = jnp.where(row < n_true, loss, 0.0)

    acc_ref[...] += jnp.sum(loss, keepdims=True)

    @pl.when(step == num_steps - 1)
    def _():
        o_ref[...] = jnp.broadcast_to(acc_ref[...], o_ref.shape)


def triplet_loss_margins(anchors, poss, negs, cs):
    """anchors/poss/negs: (N, ...) arrays; cs: (N,) int indices into MARGINS."""
    n = anchors.shape[0]
    a = anchors.reshape(n, -1)
    p = poss.reshape(n, -1)
    ng = negs.reshape(n, -1)
    d = a.shape[1]
    itemsize = jnp.dtype(a.dtype).itemsize

    num_shards_hw, vmem_budget, vmem_limit = _hw_config()
    pack = _sublane_pack(itemsize)
    tile_n = _choose_tile_n(n, d, itemsize, num_shards_hw, vmem_budget, pack)

    num_blocks = pl.cdiv(n, tile_n)            # real (possibly partial) blocks
    num_shards = min(num_shards_hw, num_blocks)
    steps = pl.cdiv(num_blocks, num_shards)
    needs_mask = (num_shards * steps * tile_n != n)

    # Per-triplet margins (tiny gather stays in the wrapper).
    margins = jnp.asarray(MARGINS, dtype=jnp.float32)[jnp.asarray(cs)]
    margins = margins.reshape(n, 1)

    if num_shards * steps > num_blocks:
        # Clamp so the grid never issues a fully out-of-bounds DMA; duplicated
        # (clamped) blocks are zeroed by the row mask above.
        idx = lambda s, t: (jnp.minimum(s * steps + t, num_blocks - 1), 0)
    else:
        idx = lambda s, t: (s * steps + t, 0)

    out = pl.pallas_call(
        functools.partial(_triplet_kernel, n_true=n, tile_n=tile_n,
                          needs_mask=needs_mask),
        out_shape=jax.ShapeDtypeStruct((num_shards * 8, 128), jnp.float32),
        grid=(num_shards, steps),
        in_specs=[
            pl.BlockSpec((tile_n, 1), idx),   # margins
            pl.BlockSpec((tile_n, d), idx),   # anchors
            pl.BlockSpec((tile_n, d), idx),   # positives
            pl.BlockSpec((tile_n, d), idx),   # negatives
        ],
        out_specs=pl.BlockSpec((8, 128), lambda s, t: (s, 0)),
        scratch_shapes=[pltpu.VMEM((1, 1), jnp.float32)],
        compiler_params=pltpu.CompilerParams(
            dimension_semantics=("parallel", "arbitrary"),
            vmem_limit_bytes=vmem_limit),
    )(margins, a, p, ng)

    partial_sums = out[0::8, 0]          # one value per shard
    return jnp.sum(partial_sums) / n


def _reference(anchors, poss, negs, cs):
    n = anchors.shape[0]
    a = anchors.reshape(n, -1).astype(jnp.float32)
    p = poss.reshape(n, -1).astype(jnp.float32)
    ng = negs.reshape(n, -1).astype(jnp.float32)
    margins = jnp.asarray(MARGINS, dtype=jnp.float32)[jnp.asarray(cs)]
    d_ap = jnp.sqrt(jnp.sum((a - p + _EPS) ** 2, axis=-1))
    d_an = jnp.sqrt(jnp.sum((a - ng + _EPS) ** 2, axis=-1))
    return jnp.mean(jnp.maximum(d_ap - d_an + margins, 0.0))


if __name__ == "__main__":
    key = jax.random.PRNGKey(0)
    k1, k2, k3 = jax.random.split(key, 3)

    # N=4 triplets, each embedding is a (4, 8, 8) feature map -> flattened D=256
    N, C, H, W = 4, 4, 8, 8
    anchors = jax.random.normal(k1, (N, C, H, W), dtype=jnp.float32)
    poss = jax.random.normal(k2, (N, C, H, W), dtype=jnp.float32)
    negs = jax.random.normal(k3, (N, C, H, W), dtype=jnp.float32)
    cs = jnp.array([0, 1, 2, 3], dtype=jnp.int32)

    out = jax.block_until_ready(triplet_loss_margins(anchors, poss, negs, cs))
    ref = _reference(anchors, poss, negs, cs)
    assert jnp.allclose(out, ref, atol=1e-5, rtol=1e-5), (out, ref)
    print("KERNEL_OK")
</pallas_src>

<mosaic_0001>
module attributes {stable_mosaic.version = 11 : i64} {
  func.func @_triplet_kernel(%arg0: i32, %arg1: i32, %arg2: memref<8x1xf32, #tpu.memory_space<vmem>>, %arg3: memref<8x256xf32, #tpu.memory_space<vmem>>, %arg4: memref<8x256xf32, #tpu.memory_space<vmem>>, %arg5: memref<8x256xf32, #tpu.memory_space<vmem>>, %arg6: memref<8x128xf32, #tpu.memory_space<vmem>>, %arg7: memref<1x1xf32, #tpu.memory_space<vmem>>) attributes {dimension_semantics = [#tpu.dimension_semantics<parallel>, #tpu.dimension_semantics<arbitrary>], iteration_bounds = array<i64: 1, 1>, scalar_prefetch = 0 : i64, scratch_operands = 1 : i64, tpu.core_type = #tpu.core_type<tc>, window_params = [{transform_indices = @transform_0, window_bounds = array<i64: 8, 1>}, {transform_indices = @transform_1, window_bounds = array<i64: 8, 256>}, {transform_indices = @transform_2, window_bounds = array<i64: 8, 256>}, {transform_indices = @transform_3, window_bounds = array<i64: 8, 256>}, {transform_indices = @transform_4, window_bounds = array<i64: 8, 128>}]} {
    %c0_i32 = arith.constant 0 : i32
    %0 = arith.cmpi eq, %arg1, %c0_i32 : i32
    %1 = arith.extui %0 : i1 to i32
    %c0_i32_0 = arith.constant 0 : i32
    %2 = arith.cmpi ne, %1, %c0_i32_0 : i32
    scf.if %2 {
      %cst_20 = arith.constant 0.000000e+00 : f32
      %46 = vector.broadcast %cst_20 : f32 to vector<1x1xf32>
      %c0_21 = arith.constant 0 : index
      %c0_22 = arith.constant 0 : index
      %47 = vector.load %arg7[%c0_21, %c0_22] : memref<1x1xf32, #tpu.memory_space<vmem>>, vector<1x1xf32>
      tpu.vector_store %arg7[%c0_21, %c0_22], %46 {strides = array<i32>} : memref<1x1xf32, #tpu.memory_space<vmem>>, vector<1x1xf32>,
    } else {
    }
    %c0 = arith.constant 0 : index
    %c0_1 = arith.constant 0 : index
    %3 = vector.load %arg3[%c0, %c0_1] : memref<8x256xf32, #tpu.memory_space<vmem>>, vector<8x256xf32>
    %c0_2 = arith.constant 0 : index
    %c0_3 = arith.constant 0 : index
    %4 = vector.load %arg4[%c0_2, %c0_3] : memref<8x256xf32, #tpu.memory_space<vmem>>, vector<8x256xf32>
    %c0_4 = arith.constant 0 : index
    %c0_5 = arith.constant 0 : index
    %5 = vector.load %arg5[%c0_4, %c0_5] : memref<8x256xf32, #tpu.memory_space<vmem>>, vector<8x256xf32>
    %6 = arith.subf %3, %4 : vector<8x256xf32>
    %cst = arith.constant 9.99999997E-7 : f32
    %7 = vector.broadcast %cst : f32 to vector<8x256xf32>
    %8 = arith.addf %6, %7 : vector<8x256xf32>
    %9 = arith.mulf %8, %8 : vector<8x256xf32>
    %cst_6 = arith.constant dense<0.000000e+00> : vector<8xf32>
    %10 = vector.multi_reduction <add>, %9, %cst_6 [1] : vector<8x256xf32> to vector<8xf32>
    %11 = vector.shape_cast %10 : vector<8xf32> to vector<8x1xf32>
    %12 = math.sqrt %11 : vector<8x1xf32>
    %13 = arith.subf %3, %5 : vector<8x256xf32>
    %cst_7 = arith.constant 9.99999997E-7 : f32
    %14 = vector.broadcast %cst_7 : f32 to vector<8x256xf32>
    %15 = arith.addf %13, %14 : vector<8x256xf32>
    %16 = arith.mulf %15, %15 : vector<8x256xf32>
    %cst_8 = arith.constant dense<0.000000e+00> : vector<8xf32>
    %17 = vector.multi_reduction <add>, %16, %cst_8 [1] : vector<8x256xf32> to vector<8xf32>
    %18 = vector.shape_cast %17 : vector<8xf32> to vector<8x1xf32>
    %19 = math.sqrt %18 : vector<8x1xf32>
    %20 = arith.subf %12, %19 : vector<8x1xf32>
    %c0_9 = arith.constant 0 : index
    %c0_10 = arith.constant 0 : index
    %21 = vector.load %arg2[%c0_9, %c0_10] : memref<8x1xf32, #tpu.memory_space<vmem>>, vector<8x1xf32>
    %22 = arith.addf %20, %21 : vector<8x1xf32>
    %cst_11 = arith.constant 0.000000e+00 : f32
    %23 = vector.broadcast %cst_11 : f32 to vector<8x1xf32>
    %24 = arith.maximumf %22, %23 : vector<8x1xf32>
    %c1_i32 = arith.constant 1 : i32
    %25 = arith.muli %arg0, %c1_i32 : i32
    %26 = arith.addi %25, %arg1 : i32
    %c8_i32 = arith.constant 8 : i32
    %27 = arith.muli %26, %c8_i32 : i32
    %28 = tpu.iota {dimensions = array<i32: 0>} : vector<8x1xi32>
    %29 = vector.broadcast %27 : i32 to vector<8x1xi32>
    %30 = arith.addi %29, %28 : vector<8x1xi32>
    %c4_i32 = arith.constant 4 : i32
    %31 = vector.broadcast %c4_i32 : i32 to vector<8x1xi32>
    %32 = arith.cmpi slt, %30, %31 : vector<8x1xi32>
    %cst_12 = arith.constant 0.000000e+00 : f32
    %33 = vector.broadcast %cst_12 : f32 to vector<8x1xf32>
    %34 = arith.select %32, %24, %33 : vector<8x1xi1>, vector<8x1xf32>
    %c0_13 = arith.constant 0 : index
    %c0_14 = arith.constant 0 : index
    %35 = vector.load %arg7[%c0_13, %c0_14] : memref<1x1xf32, #tpu.memory_space<vmem>>, vector<1x1xf32>
    %36 = vector.shape_cast %34 : vector<8x1xf32> to vector<1x8x1xf32>
    %cst_15 = arith.constant dense<0.000000e+00> : vector<1xf32>
    %37 = vector.multi_reduction <add>, %36, %cst_15 [1, 2] : vector<1x8x1xf32> to vector<1xf32>
    %38 = vector.shape_cast %37 : vector<1xf32> to vector<1x1x1xf32>
    %39 = vector.extract %38[0, 0, 0] : f32 from vector<1x1x1xf32>
    %40 = vector.broadcast %39 : f32 to vector<1x1xf32>
    %41 = arith.addf %35, %40 : vector<1x1xf32>
    %c0_16 = arith.constant 0 : index
    %c0_17 = arith.constant 0 : index
    %42 = vector.load %arg7[%c0_16, %c0_17] : memref<1x1xf32, #tpu.memory_space<vmem>>, vector<1x1xf32>
    tpu.vector_store %arg7[%c0_16, %c0_17], %41 {strides = array<i32>} : memref<1x1xf32, #tpu.memory_space<vmem>>, vector<1x1xf32>,
    %c0_i32_18 = arith.constant 0 : i32
    %43 = arith.cmpi eq, %arg1, %c0_i32_18 : i32
    %44 = arith.extui %43 : i1 to i32
    %c0_i32_19 = arith.constant 0 : i32
    %45 = arith.cmpi ne, %44, %c0_i32_19 : i32
    scf.if %45 {
      %c0_20 = arith.constant 0 : index
      %c0_21 = arith.constant 0 : index
      %46 = vector.load %arg7[%c0_20, %c0_21] : memref<1x1xf32, #tpu.memory_space<vmem>>, vector<1x1xf32>
      %47 = vector.shape_cast %46 : vector<1x1xf32> to vector<1x1xf32>
      %48 = vector.broadcast %47 : vector<1x1xf32> to vector<8x128xf32>
      %c0_22 = arith.constant 0 : index
      %c0_23 = arith.constant 0 : index
      %49 = vector.load %arg6[%c0_22, %c0_23] : memref<8x128xf32, #tpu.memory_space<vmem>>, vector<8x128xf32>
      tpu.vector_store %arg6[%c0_22, %c0_23], %48 {strides = array<i32>} : memref<8x128xf32, #tpu.memory_space<vmem>>, vector<8x128xf32>,
    } else {
    }
    return
  }
  func.func @transform_0(%arg0: i32, %arg1: i32) -> (i32, i32) {
    %c1_i32 = arith.constant 1 : i32
    %0 = arith.muli %arg0, %c1_i32 : i32
    %1 = arith.addi %0, %arg1 : i32
    %c0_i32 = arith.constant 0 : i32
    %c0_i32_0 = arith.constant 0 : i32
    return %1, %c0_i32 : i32, i32
  }
  func.func @transform_1(%arg0: i32, %arg1: i32) -> (i32, i32) {
    %c1_i32 = arith.constant 1 : i32
    %0 = arith.muli %arg0, %c1_i32 : i32
    %1 = arith.addi %0, %arg1 : i32
    %c0_i32 = arith.constant 0 : i32
    %c0_i32_0 = arith.constant 0 : i32
    return %1, %c0_i32 : i32, i32
  }
  func.func @transform_2(%arg0: i32, %arg1: i32) -> (i32, i32) {
    %c1_i32 = arith.constant 1 : i32
    %0 = arith.muli %arg0, %c1_i32 : i32
    %1 = arith.addi %0, %arg1 : i32
    %c0_i32 = arith.constant 0 : i32
    %c0_i32_0 = arith.constant 0 : i32
    return %1, %c0_i32 : i32, i32
  }
  func.func @transform_3(%arg0: i32, %arg1: i32) -> (i32, i32) {
    %c1_i32 = arith.constant 1 : i32
    %0 = arith.muli %arg0, %c1_i32 : i32
    %1 = arith.addi %0, %arg1 : i32
    %c0_i32 = arith.constant 0 : i32
    %c0_i32_0 = arith.constant 0 : i32
    return %1, %c0_i32 : i32, i32
  }
  func.func @transform_4(%arg0: i32, %arg1: i32) -> (i32, i32) {
    %c0_i32 = arith.constant 0 : i32
    %c0_i32_0 = arith.constant 0 : i32
    return %arg0, %c0_i32 : i32, i32
  }
}

</mosaic_0001>

<bundles_post_ra>
// kernel: tpu_custom_call.1
= control target key start
LH: loop header
LB: loop body
LE: loop exit
PB: predicated region body
PF: predicated region fallthrough
CT: control target
= control target key end

     0   :  { %9 = vsyncpa [#allocation4], 0  ;;  %s408_s0 = inlined_call_operand.vmem [shape: f32[4,1], index: 0, kind: input, shape index: {}]   ;;  %s409_s1 = inlined_call_operand.hbm [shape: f32[4,256], index: 1, kind: input, shape index: {}]   ;;  %s410_s2 = inlined_call_operand.vmem [shape: f32[4,256], index: 2, kind: input, shape index: {}]   ;;  %s411_s3 = inlined_call_operand.hbm [shape: f32[4,256], index: 3, kind: input, shape index: {}]   ;;  %s412_s4 = inlined_call_operand.hbm [shape: f32[8,128], index: 4, kind: output, shape index: {}]  }
   0x1   :  { %10 = vsyncpa [#allocation7], 0 }
   0x2   :  { %11 = vsyncpa [#allocation5], 0 }
   0x3   :  { %35 = vsyncadd [#allocation4], 128  ;;  %s356_s15 = smov [#allocation3]  }
   0x4   :  { %s41_s16 = sshll.u32 %s356_s15, 4  ;;  %s42_s16 = int_to_ptr.vmem [resolvable:$true] %s41_s16 }
   0x5   :  { %s298_s17 = scalar_lea.vmem %s42_s16, 128  ;;  %s302_s18 = scalar_lea.vmem %s42_s16, 256 }
   0x6   :  { %p299_p0 = scmp.ne.s32.totalorder %s42_s16, %s298_s17  ;;  %p303_p1 = scmp.lt.s32.totalorder %s42_s16, %s42_s16 }
   0x7   :  { %p304_p2 = scmp.lt.s32.totalorder %s302_s18, %s298_s17 }
   0x9   :  { %p305_p3 = por %p304_p2, %p303_p1 }
   0xb   :  { %p306_p4 = pnand %p305_p3, %p299_p0 }
   0xd   :  { %309 = shalt.err (!%p306_p4)
}
   0xe   :  { %s357_s19 = smov 128   ;;  %s358_s20 = smov 8  }
   0xf   :  { %47 = dma.hbm_to_vmem [thread:$0]  %s409_s1, 128, %s42_s16, [#allocation4], %s357_s19, %s357_s19, %s358_s20  }
  0x10   :  { %74 = vsyncadd [#allocation7], 128  ;;  %s359_s23 = smov [#allocation6]  }
  0x11   :  { %s80_s24 = sshll.u32 %s359_s23, 4  ;;  %s81_s24 = int_to_ptr.vmem [resolvable:$true] %s80_s24 }
  0x12   :  { %s318_s25 = scalar_lea.vmem %s81_s24, 128  ;;  %s322_s26 = scalar_lea.vmem %s81_s24, 256 }
  0x13   :  { %p319_p5 = scmp.ne.s32.totalorder %s81_s24, %s318_s25  ;;  %p323_p6 = scmp.lt.s32.totalorder %s81_s24, %s81_s24 }
  0x14   :  { %p324_p7 = scmp.lt.s32.totalorder %s322_s26, %s318_s25 }
  0x16   :  { %p325_p8 = por %p324_p7, %p323_p6 }
  0x18   :  { %p326_p9 = pnand %p325_p8, %p319_p5 }
  0x1a   :  { %329 = shalt.err (!%p326_p9)
}
  0x1b   :  { %86 = dma.hbm_to_vmem [thread:$0]  %s411_s3, 128, %s81_s24, [#allocation7], %s357_s19, %s357_s19, %s358_s20  }
  0x1c   :  { %350 = dma.done.wait [#allocation4], 256  }
  0x1d   :  { %351 = vsyncadd [#allocation4], 4294967040 }
  0x1e   :  { %352 = dma.done.wait [#allocation7], 256  }
  0x1f   :  { %353 = vsyncadd [#allocation7], 4294967040  ;;  %v154_v0 = vld [vmem:[#allocation3] sm:$0xff]  ;;  %v155_v1 = vld [vmem:[#allocation3 + $0x8] sm:$0xff]  ;;  %v210_v29 = vlaneseq  ;;  %vm217_vm5 = vcmask 7168   ;;  %vm152_vm6 = vcmask 0  }
  0x20   :  { %v156_v2 = vld [vmem:[%s410_s2] sm:$0xff]  ;;  %v157_v3 = vld [vmem:[%s410_s2 + $0x8] sm:$0xff]  ;;  %v360_v44 = vmov 0.0   ;;  %v361_v45 = vmov 0   ;;  %s362_s6 = smov [#allocation8]  }
  0x21   :  { %v160_v4 = vsub.f32 %v154_v0, %v156_v2  ;;  %v158_v5 = vld [vmem:[#allocation6] sm:$0xff]  ;;  %v159_v6 = vld [vmem:[#allocation6 + $0x8] sm:$0xff]  ;;  %v161_v7 = vsub.f32 %v155_v1, %v157_v3  ;;  %v211_v38 = vshrl.u32 %v210_v29, 7  ;;  %153 = vst.msk [vmem:[#allocation2] sm:$0x1] %vm152_vm6, %v360_v44  ;;  %284 = vset.pattern.permute.xlu1 %v361_v45  ;;  %285 = vset.pattern.permute.xlu0 %v361_v45  ;;  %s252_s7 = sshll.u32 %s362_s6, 4  ;;  %s253_s7 = int_to_ptr.vmem [resolvable:$true] %s252_s7 }
  0x22   :  { %v182_v8 = vsub.f32 %v154_v0, %v158_v5  ;;  %v183_v9 = vsub.f32 %v155_v1, %v159_v6  ;;  %v205_v37 = vld [vmem:[%s408_s0] sm:$0xff]  ;;  %s330_s8 = scalar_lea.vmem %s253_s7, 128  ;;  %p335_p11 = scmp.lt.s32.totalorder %s253_s7, %s253_s7 }
  0x23   :  { %v162_v10 = vadd.f32 1e-06, %v160_v4  ;;  %v163_v11 = vadd.f32 1e-06, %v161_v7  ;;  %vm214_vm4 = vcmp.lt.s32.totalorder %v211_v38, 4  ;;  %p331_p10 = scmp.ne.s32.totalorder %s253_s7, %s330_s8  ;;  %p336_p12 = scmp.lt.s32.totalorder %s330_s8, %s330_s8 }
  0x24   :  { %v184_v12 = vadd.f32 1e-06, %v182_v8  ;;  %v185_v13 = vadd.f32 1e-06, %v183_v9 }
  0x25   :  { %v164_v14 = vmul.f32 %v162_v10, %v162_v10  ;;  %v165_v15 = vmul.f32 %v163_v11, %v163_v11  ;;  %p337_p13 = por %p336_p12, %p335_p11 }
  0x26   :  { %v186_v16 = vmul.f32 %v184_v12, %v184_v12  ;;  %v187_v17 = vmul.f32 %v185_v13, %v185_v13 }
  0x27   :  { %v168_v18 = vcombine.low %v164_v14, %v165_v15  ;;  %v169_v19 = vcombine.high %v164_v14, %v165_v15  ;;  %p338_p0 = pnand %p337_p13, %p331_p10 }
  0x28   :  { %v190_v20 = vcombine.low %v186_v16, %v187_v17  ;;  %v191_v21 = vcombine.high %v186_v16, %v187_v17  ;;  %v216_v53 = vld [vmem:[#allocation2] sm:$0x1] }
  0x29   :  { %v172_v22 = vadd.f32 %v169_v19, %v168_v18 }
  0x2a   :  { %v194_v23 = vadd.f32 %v191_v21, %v190_v20 }
  0x2b   :  { %173 = vadd.xlane.f32.xlu0 %v172_v22 }
  0x2f   :  { %195 = vadd.xlane.f32.xlu0 %v194_v23 }
  0xb4   :  { %v174_v24 = vpop.xlane.xlu0 %173 }
  0xb5   :  { %286 = vrsqrt.f32 %v174_v24  ;;  %vm177_vm0 = vcmp.eq.f32.partialorder %v174_v24, inf  ;;  %v180_v33 = vand.u32 2147483648, %v174_v24  ;;  %vm179_vm2 = vcmp.eq.f32.partialorder %v174_v24, 0.0 }
  0xb8   :  { %v196_v25 = vpop.xlane.xlu0 %195 }
  0xb9   :  { %288 = vrsqrt.f32 %v196_v25  ;;  %vm199_vm1 = vcmp.eq.f32.partialorder %v196_v25, inf  ;;  %v202_v32 = vand.u32 2147483648, %v196_v25  ;;  %vm201_vm3 = vcmp.eq.f32.partialorder %v196_v25, 0.0 }
  0xc2   :  { %v287_v26 = vpop.eup %286 }
  0xc3   :  { %v176_v27 = vmul.f32 %v287_v26, %v174_v24 }
  0xc5   :  { %v178_v31 = vsel %vm177_vm0, %v174_v24, %v176_v27 }
  0xc6   :  { %v289_v28 = vpop.eup %288  ;;  %v181_v35 = vsel %vm179_vm2, %v180_v33, %v178_v31 }
  0xc7   :  { %v198_v30 = vmul.f32 %v289_v28, %v196_v25 }
  0xc9   :  { %v200_v34 = vsel %vm199_vm1, %v196_v25, %v198_v30 }
  0xca   :  { %v203_v36 = vsel %vm201_vm3, %v202_v32, %v200_v34 }
  0xcb   :  { %v204_v39 = vsub.f32 %v181_v35, %v203_v36 }
  0xcd   :  { %v206_v40 = vadd.f32 %v205_v37, %v204_v39 }
  0xcf   :  { %v207_v41 = vmax.f32 %v206_v40, 0.0 }
  0xd1   :  { %v215_v42 = vsel %vm214_vm4, %v207_v41, 0.0 }
  0xd2   :  { %v218_v43 = vsel %vm217_vm5, %v215_v42, 0.0 }
  0xd3   :  { %219 = vadd.xlane.f32.xlu1 %v218_v43 }
 0x15c   :  { %v220_v46 = vpop.xlane.xlu1 %219 }
 0x15d   :  { %v221_v47 = vrot.slane %v220_v46, 4 }
 0x15f   :  { %v222_v48 = vadd.f32 %v221_v47, %v220_v46 }
 0x161   :  { %v223_v49 = vrot.slane %v222_v48, 2 }
 0x163   :  { %v224_v50 = vadd.f32 %v223_v49, %v222_v48 }
 0x165   :  { %v225_v51 = vrot.slane %v224_v50, 1 }
 0x167   :  { %v226_v52 = vadd.f32 %v225_v51, %v224_v50 }
 0x169   :  { %275 = vpush %v226_v52 }
 0x19a   :  { %s276_s0 = spop %275 }
 0x19b   :  { %v228_v54 = vstv %s276_s0 }
 0x19c   :  { %v229_v55 = vadd.f32 %v228_v54, %v216_v53 }
 0x19e   :  { %231 = vst.msk [vmem:[#allocation2] sm:$0x1] %vm152_vm6, %v229_v55 }
 0x1a5   :  { %v274_v56 = vld [vmem:[#allocation2] ss:$0 sm:$0xff] }
 0x1a6   :  { %242 = vperm.xlu1 %284, %v274_v56  }
 0x221   :  { %v243_v57 = vpop.permute.xlu1 %242 }
 0x222   :  { %245 = vst [vmem:[#allocation8] sm:$0xff] %v243_v57 }
 0x223   :  { %341 = shalt.err (!%p338_p0)
}
 0x224   :  { %255 = dma.vmem_to_hbm [thread:$0]  %s253_s7, 128, %s412_s4, [#allocation5]  }
 0x225   :  { %354 = dma.done.wait [#allocation5], 128  }
 0x226   :  { %355 = vsyncadd [#allocation5], 4294967168 }
 0x227   :  { %259 = vsyncpa [#allocation4], 1 }
 0x228   :  { %260 = vsyncpa [#allocation7], 1 }
 0x229   :  { %261 = vsyncpa [#allocation5], 1 }

</bundles_post_ra>
